<compile_context>
chip_gen: v7x
topology: tpu7x:2x2x1
jax: 0.10.0
libtpu: 0.0.40
codegen_flags: <defaults>
</compile_context>

<pallas_src>
import jax
import jax.numpy as jnp
from jax.experimental import pallas as pl
from jax.experimental.pallas import tpu as pltpu

EPS = 1e-3  # BatchNorm2d(16, eps=0.001)


def _conv_pool(patches, w):
    """patches: (27, TP) im2col rows in (kh, kw, c) order; w: (13, 27).

    Returns (conv (13, TP), pool (3, TP)) — the un-normalized 16-channel slab
    split into its conv and max-pool parts.
    """
    conv = jnp.dot(w, patches, preferred_element_type=jnp.float32)         # (13, TP)
    # maxpool 2x2/stride 2 == max over the (kh,kw) in {1,2}x{1,2} patch rows
    # (those rows are exactly x[n, c, 2i+dh, 2j+dw], dh,dw in {0,1}).
    pool = jnp.maximum(jnp.maximum(patches[12:15, :], patches[15:18, :]),
                       jnp.maximum(patches[21:24, :], patches[24:27, :]))  # (3, TP)
    return conv, pool


def _stats_kernel(patches_ref, w_ref, sum_ref, ssq_ref):
    """Pass 1: per-tile partial BN statistics (shift-by-tile-mean form)."""
    conv, pool = _conv_pool(patches_ref[0], w_ref[...])
    inv_tp = 1.0 / conv.shape[-1]
    s_c = jnp.sum(conv, axis=1, keepdims=True)                    # (13, 1)
    s_p = jnp.sum(pool, axis=1, keepdims=True)                    # (3, 1)
    ssq_c = jnp.sum((conv - s_c * inv_tp) ** 2, axis=1, keepdims=True)
    ssq_p = jnp.sum((pool - s_p * inv_tp) ** 2, axis=1, keepdims=True)
    sum_ref[...] = jnp.concatenate([s_c, s_p], axis=0)[None]      # (1, 16, 1)
    ssq_ref[...] = jnp.concatenate([ssq_c, ssq_p], axis=0)[None]


def _norm_kernel(patches_ref, w_ref, scale_ref, shift_ref, out_ref):
    """Pass 2: recompute conv/pool, apply folded BN scale/shift + ReLU."""
    conv, pool = _conv_pool(patches_ref[0], w_ref[...])
    pre = jnp.concatenate([conv, pool], axis=0)                          # (16, TP)
    y = jnp.maximum(pre * scale_ref[...] + shift_ref[...], 0.0)          # (16, TP)
    out_ref[...] = y[None]                                               # (1, 16, TP)


def _pick_tile(P, max_tile=16384):
    """Largest 128-multiple divisor of P up to max_tile (or P itself)."""
    if P <= max_tile:
        return P
    t = max_tile - (max_tile % 128)
    while t >= 128:
        if P % t == 0:
            return t
        t -= 128
    # TODO(synk): ragged spatial tiling (pad + mask) for P with no 128-multiple
    # divisor; current fallback processes the whole image in one tile.
    return P


def initial_block(x, conv_w, bn_gamma, bn_beta):
    """x: (N, 3, H, W) f32 NCHW -> (N, 16, H//2, W//2) f32 NCHW."""
    N, C, H, W = x.shape
    assert C == 3 and H % 2 == 0 and W % 2 == 0
    Ho, Wo = H // 2, W // 2
    P = Ho * Wo
    TP = _pick_tile(P)
    n_sp = P // TP
    G = N * n_sp

    # --- layout glue: channel-major im2col, row order (kh, kw, c) ---
    xp = jnp.pad(x, ((0, 0), (0, 0), (1, 1), (1, 1)))
    taps = [xp[:, :, kh:kh + 2 * Ho:2, kw:kw + 2 * Wo:2]        # (N, 3, Ho, Wo)
            for kh in range(3) for kw in range(3)]
    patches = jnp.stack(taps, axis=1).reshape(N, 27, P)          # (N, 27, P)
    # TODO(synk): build the 9 taps inside the kernel from a halo-tiled raw
    # input (manual DMA / pl.ANY) to remove the remaining im2col HBM inflation;
    # pool taps are already folded into this single array.

    # conv weights (13, 3, 3, 3) -> (13, 27) with K ordered (kh, kw, c).
    w_mat = jnp.transpose(conv_w, (0, 2, 3, 1)).reshape(13, 27)
    # conv bias intentionally omitted: training-mode BN cancels it exactly.

    patches_spec = pl.BlockSpec((1, 27, TP), lambda n, s: (n, 0, s))
    w_spec = pl.BlockSpec((13, 27), lambda n, s: (0, 0))
    cparams = pltpu.CompilerParams(
        dimension_semantics=("parallel", "parallel"),
        vmem_limit_bytes=32 * 1024 * 1024)

    # ---- pass 1: per-tile partial statistics ----
    sums, ssqs = pl.pallas_call(
        _stats_kernel,
        out_shape=(jax.ShapeDtypeStruct((G, 16, 1), jnp.float32),
                   jax.ShapeDtypeStruct((G, 16, 1), jnp.float32)),
        grid=(N, n_sp),
        in_specs=[patches_spec, w_spec],
        out_specs=(pl.BlockSpec((1, 16, 1), lambda n, s: (n * n_sp + s, 0, 0)),
                   pl.BlockSpec((1, 16, 1), lambda n, s: (n * n_sp + s, 0, 0))),
        compiler_params=cparams,
    )(patches, w_mat)

    # ---- combine tile stats (Chan's parallel formula; tiny, done in JAX) ----
    tile_sum = sums[:, :, 0]                                    # (G, 16)
    tile_ssq = ssqs[:, :, 0]                                    # (G, 16)
    count = float(N * P)
    mean = jnp.sum(tile_sum, axis=0) / count                    # (16,)
    tile_mean = tile_sum / float(TP)
    var = (jnp.sum(tile_ssq, axis=0)
           + float(TP) * jnp.sum((tile_mean - mean) ** 2, axis=0)) / count
    scale = (bn_gamma * jax.lax.rsqrt(var + EPS)).reshape(16, 1)
    shift = (bn_beta - mean * scale[:, 0]).reshape(16, 1)
    # TODO(synk): running_mean/running_var buffer updates (training side
    # effect) are not reproduced; forward output is unaffected.

    # ---- pass 2: recompute conv/pool, normalize + ReLU, lane-dense store ----
    out = pl.pallas_call(
        _norm_kernel,
        out_shape=jax.ShapeDtypeStruct((N, 16, P), jnp.float32),
        grid=(N, n_sp),
        in_specs=[patches_spec, w_spec,
                  pl.BlockSpec((16, 1), lambda n, s: (0, 0)),
                  pl.BlockSpec((16, 1), lambda n, s: (0, 0))],
        out_specs=pl.BlockSpec((1, 16, TP), lambda n, s: (n, 0, s)),
        compiler_params=cparams,
    )(patches, w_mat, scale, shift)

    return out.reshape(N, 16, Ho, Wo)


def encoder_forward(x, conv_w, bn_gamma, bn_beta):
    # Encoder(params=[], nclasses).forward(x, predict=False) == InitialBlock(x).
    # TODO(synk): EncoderModule layers and the predict-time 1x1 output_conv are
    # not implemented (demo Encoder is built with an empty params list).
    return initial_block(x, conv_w, bn_gamma, bn_beta)


def _reference(x, conv_w, conv_b, bn_gamma, bn_beta):
    """Pure-JAX reference (includes the conv bias, which BN cancels)."""
    N, C, H, W = x.shape
    Ho, Wo = H // 2, W // 2
    conv = jax.lax.conv_general_dilated(
        x, conv_w, window_strides=(2, 2), padding=((1, 1), (1, 1)),
        dimension_numbers=("NCHW", "OIHW", "NCHW")) + conv_b.reshape(1, 13, 1, 1)
    pool = x.reshape(N, C, Ho, 2, Wo, 2).max(axis=(3, 5))
    pre = jnp.concatenate([conv, pool], axis=1)                 # (N, 16, Ho, Wo)
    mean = pre.mean(axis=(0, 2, 3), keepdims=True)
    var = ((pre - mean) ** 2).mean(axis=(0, 2, 3), keepdims=True)
    y = (pre - mean) * jax.lax.rsqrt(var + EPS)
    y = y * bn_gamma.reshape(1, 16, 1, 1) + bn_beta.reshape(1, 16, 1, 1)
    return jnp.maximum(y, 0.0)


if __name__ == "__main__":
    key = jax.random.PRNGKey(0)
    k_x, k_w, k_b = jax.random.split(key, 3)

    N, C, H, W = 2, 3, 16, 16
    x = jax.random.normal(k_x, (N, C, H, W), dtype=jnp.float32)

    # Deterministic parameter init (shapes from the module's __init__).
    fan_in = 3 * 3 * 3
    bound = 1.0 / float(fan_in) ** 0.5
    conv_w = jax.random.uniform(k_w, (13, 3, 3, 3), jnp.float32, -bound, bound)
    conv_b = jax.random.uniform(k_b, (13,), jnp.float32, -bound, bound)
    bn_gamma = jnp.ones((16,), jnp.float32)   # PyTorch BatchNorm2d defaults
    bn_beta = jnp.zeros((16,), jnp.float32)

    y = jax.jit(encoder_forward)(x, conv_w, bn_gamma, bn_beta)
    y = jax.block_until_ready(y)
    assert y.shape == (N, 16, H // 2, W // 2)
    assert bool(jnp.all(y >= 0.0))            # ReLU output

    # Correctness vs pure-JAX reference (bias included there; BN cancels it).
    y_ref = _reference(x, conv_w, conv_b, bn_gamma, bn_beta)
    err = float(jnp.max(jnp.abs(y - y_ref)))
    assert err < 1e-3, f"max abs error vs reference: {err}"

    print("KERNEL_OK")
</pallas_src>

<mosaic_0001>
module attributes {stable_mosaic.version = 11 : i64} {
  func.func @_stats_kernel(%arg0: i32, %arg1: i32, %arg2: memref<1x27x64xf32, #tpu.memory_space<vmem>>, %arg3: memref<13x27xf32, #tpu.memory_space<vmem>>, %arg4: memref<1x16x1xf32, #tpu.memory_space<vmem>>, %arg5: memref<1x16x1xf32, #tpu.memory_space<vmem>>) attributes {dimension_semantics = [#tpu.dimension_semantics<parallel>, #tpu.dimension_semantics<parallel>], iteration_bounds = array<i64: 2, 1>, scalar_prefetch = 0 : i64, scratch_operands = 0 : i64, tpu.core_type = #tpu.core_type<tc>, window_params = [{transform_indices = @transform_0, window_bounds = array<i64: 1, 27, 64>}, {pipeline_mode = #tpu.pipeline_mode<synchronous>, transform_indices = @transform_1, window_bounds = array<i64: 13, 27>}, {transform_indices = @transform_2, window_bounds = array<i64: 1, 16, 1>}, {transform_indices = @transform_3, window_bounds = array<i64: 1, 16, 1>}]} {
    %c0 = arith.constant 0 : index
    %c0_0 = arith.constant 0 : index
    %c0_1 = arith.constant 0 : index
    %0 = vector.load %arg2[%c0, %c0_0, %c0_1] : memref<1x27x64xf32, #tpu.memory_space<vmem>>, vector<1x27x64xf32>
    %1 = vector.shape_cast %0 : vector<1x27x64xf32> to vector<27x64xf32>
    %c0_2 = arith.constant 0 : index
    %c0_3 = arith.constant 0 : index
    %2 = vector.load %arg3[%c0_2, %c0_3] : memref<13x27xf32, #tpu.memory_space<vmem>>, vector<13x27xf32>
    %cst = arith.constant dense<0.000000e+00> : vector<13x64xf32>
    %3 = tpu.matmul %2, %1, %cst {dimension_numbers = #tpu.dot_dimension_numbers<[1], [0], [0], [1], [0, 0, 1, 1], [], []>} : vector<13x27xf32>, vector<27x64xf32>, vector<13x64xf32> -> vector<13x64xf32>
    %4 = vector.extract_strided_slice %1 {offsets = [12, 0], sizes = [3, 64], strides = [1, 1]} : vector<27x64xf32> to vector<3x64xf32>
    %5 = vector.extract_strided_slice %1 {offsets = [15, 0], sizes = [3, 64], strides = [1, 1]} : vector<27x64xf32> to vector<3x64xf32>
    %6 = arith.maximumf %4, %5 : vector<3x64xf32>
    %7 = vector.extract_strided_slice %1 {offsets = [21, 0], sizes = [3, 64], strides = [1, 1]} : vector<27x64xf32> to vector<3x64xf32>
    %8 = vector.extract_strided_slice %1 {offsets = [24, 0], sizes = [3, 64], strides = [1, 1]} : vector<27x64xf32> to vector<3x64xf32>
    %9 = arith.maximumf %7, %8 : vector<3x64xf32>
    %10 = arith.maximumf %6, %9 : vector<3x64xf32>
    %cst_4 = arith.constant dense<0.000000e+00> : vector<13xf32>
    %11 = vector.multi_reduction <add>, %3, %cst_4 [1] : vector<13x64xf32> to vector<13xf32>
    %12 = vector.shape_cast %11 : vector<13xf32> to vector<13x1xf32>
    %cst_5 = arith.constant dense<0.000000e+00> : vector<3xf32>
    %13 = vector.multi_reduction <add>, %10, %cst_5 [1] : vector<3x64xf32> to vector<3xf32>
    %14 = vector.shape_cast %13 : vector<3xf32> to vector<3x1xf32>
    %cst_6 = arith.constant 1.562500e-02 : f32
    %15 = vector.broadcast %cst_6 : f32 to vector<13x1xf32>
    %16 = arith.mulf %12, %15 : vector<13x1xf32>
    %17 = vector.broadcast %16 : vector<13x1xf32> to vector<13x64xf32>
    %18 = arith.subf %3, %17 : vector<13x64xf32>
    %19 = arith.mulf %18, %18 : vector<13x64xf32>
    %cst_7 = arith.constant dense<0.000000e+00> : vector<13xf32>
    %20 = vector.multi_reduction <add>, %19, %cst_7 [1] : vector<13x64xf32> to vector<13xf32>
    %21 = vector.shape_cast %20 : vector<13xf32> to vector<13x1xf32>
    %cst_8 = arith.constant 1.562500e-02 : f32
    %22 = vector.broadcast %cst_8 : f32 to vector<3x1xf32>
    %23 = arith.mulf %14, %22 : vector<3x1xf32>
    %24 = vector.broadcast %23 : vector<3x1xf32> to vector<3x64xf32>
    %25 = arith.subf %10, %24 : vector<3x64xf32>
    %26 = arith.mulf %25, %25 : vector<3x64xf32>
    %cst_9 = arith.constant dense<0.000000e+00> : vector<3xf32>
    %27 = vector.multi_reduction <add>, %26, %cst_9 [1] : vector<3x64xf32> to vector<3xf32>
    %28 = vector.shape_cast %27 : vector<3xf32> to vector<3x1xf32>
    %29 = tpu.concatenate %12, %14 in 0 : vector<13x1xf32>, vector<3x1xf32> -> vector<16x1xf32>
    %30 = vector.shape_cast %29 : vector<16x1xf32> to vector<1x16x1xf32>
    %c0_10 = arith.constant 0 : index
    %c0_11 = arith.constant 0 : index
    %c0_12 = arith.constant 0 : index
    %31 = vector.load %arg4[%c0_10, %c0_11, %c0_12] : memref<1x16x1xf32, #tpu.memory_space<vmem>>, vector<1x16x1xf32>
    tpu.vector_store %arg4[%c0_10, %c0_11, %c0_12], %30 {strides = array<i32>} : memref<1x16x1xf32, #tpu.memory_space<vmem>>, vector<1x16x1xf32>,
    %32 = tpu.concatenate %21, %28 in 0 : vector<13x1xf32>, vector<3x1xf32> -> vector<16x1xf32>
    %33 = vector.shape_cast %32 : vector<16x1xf32> to vector<1x16x1xf32>
    %c0_13 = arith.constant 0 : index
    %c0_14 = arith.constant 0 : index
    %c0_15 = arith.constant 0 : index
    %34 = vector.load %arg5[%c0_13, %c0_14, %c0_15] : memref<1x16x1xf32, #tpu.memory_space<vmem>>, vector<1x16x1xf32>
    tpu.vector_store %arg5[%c0_13, %c0_14, %c0_15], %33 {strides = array<i32>} : memref<1x16x1xf32, #tpu.memory_space<vmem>>, vector<1x16x1xf32>,
    return
  }
  func.func @transform_0(%arg0: i32, %arg1: i32) -> (i32, i32, i32) {
    %c0_i32 = arith.constant 0 : i32
    %c0_i32_0 = arith.constant 0 : i32
    return %arg0, %c0_i32, %arg1 : i32, i32, i32
  }
  func.func @transform_1(%arg0: i32, %arg1: i32) -> (i32, i32) {
    %c0_i32 = arith.constant 0 : i32
    %c0_i32_0 = arith.constant 0 : i32
    %c0_i32_1 = arith.constant 0 : i32
    return %c0_i32, %c0_i32_0 : i32, i32
  }
  func.func @transform_2(%arg0: i32, %arg1: i32) -> (i32, i32, i32) {
    %c1_i32 = arith.constant 1 : i32
    %0 = arith.muli %arg0, %c1_i32 : i32
    %1 = arith.addi %0, %arg1 : i32
    %c0_i32 = arith.constant 0 : i32
    %c0_i32_0 = arith.constant 0 : i32
    %c0_i32_1 = arith.constant 0 : i32
    return %1, %c0_i32, %c0_i32_0 : i32, i32, i32
  }
  func.func @transform_3(%arg0: i32, %arg1: i32) -> (i32, i32, i32) {
    %c1_i32 = arith.constant 1 : i32
    %0 = arith.muli %arg0, %c1_i32 : i32
    %1 = arith.addi %0, %arg1 : i32
    %c0_i32 = arith.constant 0 : i32
    %c0_i32_0 = arith.constant 0 : i32
    %c0_i32_1 = arith.constant 0 : i32
    return %1, %c0_i32, %c0_i32_0 : i32, i32, i32
  }
}

module attributes {stable_mosaic.version = 11 : i64} {
  func.func @_norm_kernel(%arg0: i32, %arg1: i32, %arg2: memref<1x27x64xf32, #tpu.memory_space<vmem>>, %arg3: memref<13x27xf32, #tpu.memory_space<vmem>>, %arg4: memref<16x1xf32, #tpu.memory_space<vmem>>, %arg5: memref<16x1xf32, #tpu.memory_space<vmem>>, %arg6: memref<1x16x64xf32, #tpu.memory_space<vmem>>) attributes {dimension_semantics = [#tpu.dimension_semantics<parallel>, #tpu.dimension_semantics<parallel>], iteration_bounds = array<i64: 2, 1>, scalar_prefetch = 0 : i64, scratch_operands = 0 : i64, tpu.core_type = #tpu.core_type<tc>, window_params = [{transform_indices = @transform_0, window_bounds = array<i64: 1, 27, 64>}, {pipeline_mode = #tpu.pipeline_mode<synchronous>, transform_indices = @transform_1, window_bounds = array<i64: 13, 27>}, {pipeline_mode = #tpu.pipeline_mode<synchronous>, transform_indices = @transform_2, window_bounds = array<i64: 16, 1>}, {pipeline_mode = #tpu.pipeline_mode<synchronous>, transform_indices = @transform_3, window_bounds = array<i64: 16, 1>}, {transform_indices = @transform_4, window_bounds = array<i64: 1, 16, 64>}]} {
    %c0 = arith.constant 0 : index
    %c0_0 = arith.constant 0 : index
    %c0_1 = arith.constant 0 : index
    %0 = vector.load %arg2[%c0, %c0_0, %c0_1] : memref<1x27x64xf32, #tpu.memory_space<vmem>>, vector<1x27x64xf32>
    %1 = vector.shape_cast %0 : vector<1x27x64xf32> to vector<27x64xf32>
    %c0_2 = arith.constant 0 : index
    %c0_3 = arith.constant 0 : index
    %2 = vector.load %arg3[%c0_2, %c0_3] : memref<13x27xf32, #tpu.memory_space<vmem>>, vector<13x27xf32>
    %cst = arith.constant dense<0.000000e+00> : vector<13x64xf32>
    %3 = tpu.matmul %2, %1, %cst {dimension_numbers = #tpu.dot_dimension_numbers<[1], [0], [0], [1], [0, 0, 1, 1], [], []>} : vector<13x27xf32>, vector<27x64xf32>, vector<13x64xf32> -> vector<13x64xf32>
    %4 = vector.extract_strided_slice %1 {offsets = [12, 0], sizes = [3, 64], strides = [1, 1]} : vector<27x64xf32> to vector<3x64xf32>
    %5 = vector.extract_strided_slice %1 {offsets = [15, 0], sizes = [3, 64], strides = [1, 1]} : vector<27x64xf32> to vector<3x64xf32>
    %6 = arith.maximumf %4, %5 : vector<3x64xf32>
    %7 = vector.extract_strided_slice %1 {offsets = [21, 0], sizes = [3, 64], strides = [1, 1]} : vector<27x64xf32> to vector<3x64xf32>
    %8 = vector.extract_strided_slice %1 {offsets = [24, 0], sizes = [3, 64], strides = [1, 1]} : vector<27x64xf32> to vector<3x64xf32>
    %9 = arith.maximumf %7, %8 : vector<3x64xf32>
    %10 = arith.maximumf %6, %9 : vector<3x64xf32>
    %11 = tpu.concatenate %3, %10 in 0 : vector<13x64xf32>, vector<3x64xf32> -> vector<16x64xf32>
    %c0_4 = arith.constant 0 : index
    %c0_5 = arith.constant 0 : index
    %12 = vector.load %arg4[%c0_4, %c0_5] : memref<16x1xf32, #tpu.memory_space<vmem>>, vector<16x1xf32>
    %13 = vector.broadcast %12 : vector<16x1xf32> to vector<16x64xf32>
    %14 = arith.mulf %11, %13 : vector<16x64xf32>
    %c0_6 = arith.constant 0 : index
    %c0_7 = arith.constant 0 : index
    %15 = vector.load %arg5[%c0_6, %c0_7] : memref<16x1xf32, #tpu.memory_space<vmem>>, vector<16x1xf32>
    %16 = vector.broadcast %15 : vector<16x1xf32> to vector<16x64xf32>
    %17 = arith.addf %14, %16 : vector<16x64xf32>
    %cst_8 = arith.constant 0.000000e+00 : f32
    %18 = vector.broadcast %cst_8 : f32 to vector<16x64xf32>
    %19 = arith.maximumf %17, %18 : vector<16x64xf32>
    %20 = vector.shape_cast %19 : vector<16x64xf32> to vector<1x16x64xf32>
    %c0_9 = arith.constant 0 : index
    %c0_10 = arith.constant 0 : index
    %c0_11 = arith.constant 0 : index
    %21 = vector.load %arg6[%c0_9, %c0_10, %c0_11] : memref<1x16x64xf32, #tpu.memory_space<vmem>>, vector<1x16x64xf32>
    tpu.vector_store %arg6[%c0_9, %c0_10, %c0_11], %20 {strides = array<i32>} : memref<1x16x64xf32, #tpu.memory_space<vmem>>, vector<1x16x64xf32>,
    return
  }
  func.func @transform_0(%arg0: i32, %arg1: i32) -> (i32, i32, i32) {
    %c0_i32 = arith.constant 0 : i32
    %c0_i32_0 = arith.constant 0 : i32
    return %arg0, %c0_i32, %arg1 : i32, i32, i32
  }
  func.func @transform_1(%arg0: i32, %arg1: i32) -> (i32, i32) {
    %c0_i32 = arith.constant 0 : i32
    %c0_i32_0 = arith.constant 0 : i32
    %c0_i32_1 = arith.constant 0 : i32
    return %c0_i32, %c0_i32_0 : i32, i32
  }
  func.func @transform_2(%arg0: i32, %arg1: i32) -> (i32, i32) {
    %c0_i32 = arith.constant 0 : i32
    %c0_i32_0 = arith.constant 0 : i32
    %c0_i32_1 = arith.constant 0 : i32
    return %c0_i32, %c0_i32_0 : i32, i32
  }
  func.func @transform_3(%arg0: i32, %arg1: i32) -> (i32, i32) {
    %c0_i32 = arith.constant 0 : i32
    %c0_i32_0 = arith.constant 0 : i32
    %c0_i32_1 = arith.constant 0 : i32
    return %c0_i32, %c0_i32_0 : i32, i32
  }
  func.func @transform_4(%arg0: i32, %arg1: i32) -> (i32, i32, i32) {
    %c0_i32 = arith.constant 0 : i32
    %c0_i32_0 = arith.constant 0 : i32
    return %arg0, %c0_i32, %arg1 : i32, i32, i32
  }
}

</mosaic_0001>

<bundles_post_ra>
// kernel: encoder_forward.3
= control target key start
LH: loop header
LB: loop body
LE: loop exit
PB: predicated region body
PF: predicated region fallthrough
CT: control target
= control target key end

     0   :  { %s578_s15 = smov 0   ;;  %s580_s16 = smov 0   ;;  %s635_s0 = inlined_call_operand.vmem [shape: f32[2,27,64], index: 0, kind: input, shape index: {}]   ;;  %s636_s1 = inlined_call_operand.vmem [shape: f32[13,27], index: 1, kind: input, shape index: {}]   ;;  %s637_s2 = inlined_call_operand.vmem [shape: f32[16,1], index: 2, kind: input, shape index: {}]   ;;  %s638_s3 = inlined_call_operand.vmem [shape: f32[16,1], index: 3, kind: input, shape index: {}]   ;;  %s639_s4 = inlined_call_operand.vmem [shape: f32[2,16,64], index: 4, kind: output, shape index: {}]  }
   0x1   :  { %s582_s17 = smov 0  }
   0x2 LB: > { %s26_s18 = sadd.s32 1, %s545_s16  ;;  %p460_p0 = scmp.ge.s32.totalorder %s549_s17, 1  ;;  %s549_s17 = sphi %s582_s17, %s14_s17   ;;  %s545_s16 = sphi %s580_s16, %s641_s16   ;;  %s541_s15 = sphi %s578_s15, %s640_s15  }
   0x3   : > { %p28_p1 = scmp.ge.s32.totalorder %s26_s18, 2  ;;  %p181_p2 = scmp.lt.s32.totalorder %s549_s17, 3 }
   0x5   : > { %s643_s18 = smov (%p28_p1, %s26_s18), 0  ;;  %p182_p3 = pnand %p460_p0, %p181_p2 }
   0x6   : > { %p213_p4 = scmp.lt.s32.totalorder (!%p182_p3), %s541_s15, 1  ;;  %v233_v0 = vld [vmem:[%s636_s1] sm:$0xff] (!%p182_p3)  ;;  %vm235_vm0 = vcmask (!%p182_p3), 220160   ;;  %v551_v1 = vmov (!%p182_p3), 0   ;;  %v341_v4 = vld [vmem:[%s637_s2 + $0x8] sm:$0xff] (!%p182_p3)  ;;  %vm242_vm1 = vcmask (!%p182_p3), 1042432  }
   0x7   : > { %185 = sbr.rel (%p182_p3) target bundleno = 248 (0xf8), region = 36  ;;  %486 = vmatprep.mubr.msk.f32.mxu0 (!%p182_p3), %vm235_vm0, %v233_v0  ;;  %525 = vset.pattern.permute.xlu0 (!%p182_p3), %v551_v1  ;;  %v340_v2 = vld [vmem:[%s637_s2] sm:$0xff] (!%p182_p3)  ;;  %v355_v5 = vld [vmem:[%s638_s3 + $0x8] sm:$0xff] (!%p182_p3)  ;;  %vm552_vm2 = vmmov (!%p182_p3), 1   ;;  %vm323_vm4 = vcmask (!%p182_p3), 1044480   ;;  %vm370_vm5 = vcmask (!%p182_p3), 523264  }
   0x8   : > { %344 = vperm.xlu0 (!%p182_p3), %525, %v340_v2   ;;  %526 = vset.pattern.permute.xlu1 (!%p182_p3), %v551_v1  ;;  %v354_v3 = vld [vmem:[%s638_s3] sm:$0xff] (!%p182_p3)  ;;  %vm494_vm3 = vmpackc.low (!%p182_p3), %vm242_vm1, %vm552_vm2  ;;  %v234_v12 = vld [vmem:[%s636_s1 + $0x8] sm:$0x1f] (!%p182_p3) }
   0x9   : > { %358 = vperm.xlu1 (!%p182_p3), %526, %v354_v3  }
   0xc   : > { %349 = vperm.xlu0 (!%p182_p3), %525, %v341_v4  }
   0xd   : > { %363 = vperm.xlu1 (!%p182_p3), %526, %v355_v5  }
   0xe   : > { %s645_s15 = smov (!%p213_p4, %s541_s15), 1 }
   0xf   : > { %s470_s27 = sshll.u32 %s645_s15, 5  ;;  %s471_s9 = sshll.u32 %s645_s15, 4 }
  0x10   : > { %s220_s6 = scalar_lea.vmem %s635_s0, %s470_s27  ;;  %s228_s12 = scalar_lea.vmem %s639_s4, %s471_s9 }
  0x11   : > { %v229_v6 = vld [vmem:[%s220_s6] sm:$0xff]  ;;  %v230_v7 = vld [vmem:[%s220_s6 + $0x8] sm:$0xff]  ;;  %v231_v8 = vld [vmem:[%s220_s6 + $0x10] sm:$0xff] }
  0x12   : > { %v489_v9 = vpack.c.bf16 %v230_v7, %v229_v6  ;;  %v232_v10 = vld [vmem:[%s220_s6 + $0x18] sm:$0x7]  ;;  %v324_v14 = vrot.slane %v230_v7, 3  ;;  %v325_v15 = vrot.slane %v231_v8, 3 }
  0x13   : > { %v493_v11 = vpack.c.bf16 %v232_v10, %v231_v8  ;;  %v329_v13 = vrot.slane %v232_v10, 3 }
  0x14   : > { %490 = vmatprep.subr.bf16.mxu0 %v489_v9  ;;  %v326_v17 = vsel %vm323_vm4, %v324_v14, %v325_v15 }
  0x15   : > { %492 = vmatpush3.bf16.msra.mxu0 %v489_v9  ;;  %v331_v16 = vmax.f32 %v231_v8, %v329_v13  ;;  %v328_v18 = vmax.f32 %v230_v7, %v326_v17 }
  0x16   : > { %495 = vmatprep.subr.msk.bf16.mxu0 %vm494_vm3, %v493_v11 }
  0x17   : > { %v333_v19 = vrot.slane %v331_v16, 1 }
  0x19   : > { %498 = vmatpush3.bf16.msk.msra.mxu0 %vm494_vm3, %v493_v11  ;;  %v335_v20 = vmax.f32 %v328_v18, %v333_v19 }
  0x1b   : > { %v337_v23 = vrot.slane %v335_v20, 7 }
  0x1c   : > { %487 = vmatmul.mubr.msk.f32.vlgmr.msra.gmra.mrb[0].mxu0 %vm235_vm0, %v234_v12 }
  0x87   : > { %v345_v21 = vpop.permute.xlu0 %344 }
  0x88   : > { %v359_v22 = vpop.permute.xlu1 %358 }
  0x8b   : > { %v350_v25 = vpop.permute.xlu0 %349 }
  0x8c   : > { %v364_v30 = vpop.permute.xlu1 %363 }
  0xef   : > { %v488_v24 = vpop.f32.mrb[0].mxu0 }
  0xf0   : > { %v339_v26 = vsel %vm323_vm4, %v488_v24, %v337_v23  ;;  %v312_v27 = vpop.f32.mrb[1].mxu0 }
  0xf1   : > { %v353_v28 = vmul.f32 %v350_v25, %v339_v26  ;;  %v352_v29 = vmul.f32 %v345_v21, %v312_v27 }
  0xf3   : > { %v367_v31 = vadd.f32 %v364_v30, %v353_v28  ;;  %v366_v32 = vadd.f32 %v359_v22, %v352_v29 }
  0xf5   : > { %v369_v33 = vmax.f32 %v367_v31, 0.0  ;;  %v368_v34 = vmax.f32 %v366_v32, 0.0 }
  0xf7   : > { %372 = vst.msk [vmem:[%s228_s12 + $0x8] sm:$0xff] %vm370_vm5, %v369_v33  ;;  %371 = vst.msk [vmem:[%s228_s12] sm:$0xff] %vm370_vm5, %v368_v34 }
  0xf8 PF: > { %s14_s17 = sadd.s32 1, %s549_s17   ;;  %s640_s15 = smov %s545_s16 }
  0xf9   : > { %p11_p5 = scmp.ge.s32.totalorder %s14_s17, 4   ;;  %s641_s16 = smov %s643_s18 }
  0xfb   :  { %13 = sbr.rel (!%p11_p5) target bundleno = 2 (0x2), region = 66 }

// kernel: encoder_forward.2
= control target key start
LH: loop header
LB: loop body
LE: loop exit
PB: predicated region body
PF: predicated region fallthrough
CT: control target
= control target key end

     0   :  { %s592_s12 = smov 0   ;;  %s594_s13 = smov 0   ;;  %s653_s0 = inlined_call_operand.vmem [shape: f32[2,27,64], index: 0, kind: input, shape index: {}]   ;;  %s654_s1 = inlined_call_operand.vmem [shape: f32[13,27], index: 1, kind: input, shape index: {}]   ;;  %s655_s2 = inlined_call_operand.vmem [shape: f32[2,16,1], index: 2, kind: output, shape index: {0}]   ;;  %s656_s3 = inlined_call_operand.vmem [shape: f32[2,16,1], index: 3, kind: output, shape index: {1}]  }
   0x1   :  { %s596_s14 = smov 0  }
   0x2 LB: > { %s26_s15 = sadd.s32 1, %s565_s13  ;;  %p480_p0 = scmp.ge.s32.totalorder %s569_s14, 1  ;;  %s569_s14 = sphi %s596_s14, %s14_s14   ;;  %s565_s13 = sphi %s594_s13, %s658_s13   ;;  %s561_s12 = sphi %s592_s12, %s657_s12  }
   0x3   : > { %p28_p1 = scmp.ge.s32.totalorder %s26_s15, 2  ;;  %p161_p2 = scmp.lt.s32.totalorder %s569_s14, 3 }
   0x5   : > { %s660_s15 = smov (%p28_p1, %s26_s15), 0  ;;  %p162_p3 = pnand %p480_p0, %p161_p2 }
   0x6   : > { %p195_p4 = scmp.lt.s32.totalorder (!%p162_p3), %s561_s12, 1  ;;  %v221_v0 = vld [vmem:[%s654_s1] sm:$0xff] (!%p162_p3)  ;;  %vm223_vm0 = vcmask (!%p162_p3), 220160   ;;  %vm230_vm1 = vcmask (!%p162_p3), 1042432   ;;  %vm311_vm2 = vcmask (!%p162_p3), 1044480   ;;  %vm571_vm3 = vmmov (!%p162_p3), 1  }
   0x7   : > { %165 = sbr.rel (%p162_p3) target bundleno = 534 (0x216), region = 28  ;;  %509 = vmatprep.mubr.msk.f32.mxu0 (!%p162_p3), %vm223_vm0, %v221_v0  ;;  %vm517_vm4 = vmpackc.low (!%p162_p3), %vm230_vm1, %vm571_vm3  ;;  %vm332_vm5 = vcmask (!%p162_p3), 522244   ;;  %v222_v14 = vld [vmem:[%s654_s1 + $0x8] sm:$0x1f] (!%p162_p3)  ;;  %vm328_vm6 = vcmask (!%p162_p3), 520192   ;;  %vm324_vm7 = vcmask (!%p162_p3), 523264  }
   0x8   : > { %vm358_vm8 = vcmask (!%p162_p3), 7168  }
   0xe   : > { %s662_s12 = smov (!%p195_p4, %s561_s12), 1 }
   0xf   : > { %s492_s18 = sshll.u32 %s662_s12, 5  ;;  %s493_s24 = sshll.u32 %s662_s12, 4 }
  0x10   : > { %s202_s21 = scalar_lea.vmem %s653_s0, %s492_s18  ;;  %s208_s27 = scalar_lea.vmem %s655_s2, %s493_s24 }
  0x11   : > { %v217_v1 = vld [vmem:[%s202_s21] sm:$0xff]  ;;  %v218_v2 = vld [vmem:[%s202_s21 + $0x8] sm:$0xff]  ;;  %v219_v3 = vld [vmem:[%s202_s21 + $0x10] sm:$0xff]  ;;  %s215_s30 = scalar_lea.vmem %s656_s3, %s493_s24 }
  0x12   : > { %v512_v4 = vpack.c.bf16 %v218_v2, %v217_v1  ;;  %v312_v5 = vrot.slane %v218_v2, 3  ;;  %v220_v6 = vld [vmem:[%s202_s21 + $0x18] sm:$0x7]  ;;  %v313_v7 = vrot.slane %v219_v3, 3 }
  0x13   : > { %v516_v8 = vpack.c.bf16 %v220_v6, %v219_v3  ;;  %v317_v9 = vrot.slane %v220_v6, 3 }
  0x14   : > { %513 = vmatprep.subr.bf16.mxu0 %v512_v4  ;;  %v314_v10 = vsel %vm311_vm2, %v312_v5, %v313_v7 }
  0x15   : > { %515 = vmatpush3.bf16.msra.mxu0 %v512_v4  ;;  %v316_v11 = vmax.f32 %v218_v2, %v314_v10  ;;  %v319_v12 = vmax.f32 %v219_v3, %v317_v9 }
  0x16   : > { %518 = vmatprep.subr.msk.bf16.mxu0 %vm517_vm4, %v516_v8 }
  0x17   : > { %v321_v13 = vrot.slane %v319_v12, 1 }
  0x19   : > { %521 = vmatpush3.bf16.msk.msra.mxu0 %vm517_vm4, %v516_v8  ;;  %v323_v15 = vmax.f32 %v316_v11, %v321_v13 }
  0x1b   : > { %v333_v16 = vsel %vm332_vm5, %v323_v15, 0.0 }
  0x1c   : > { %510 = vmatmul.mubr.msk.f32.vlgmr.msra.gmra.mrb[0].mxu0 %vm223_vm0, %v222_v14  ;;  %334 = vadd.xlane.f32.xlu0 %v333_v16 }
  0xa9   : > { %v335_v21 = vpop.xlane.xlu0 %334 }
  0xaa   : > { %v348_v22 = vmul.f32 0.015625, %v335_v21  ;;  %v355_v26 = vrot.slane %v335_v21, 7 }
  0xac   : > { %v349_v23 = vsub.f32 %v323_v15, %v348_v22 }
  0xae   : > { %v350_v24 = vmul.f32 %v349_v23, %v349_v23 }
  0xb0   : > { %v351_v25 = vsel %vm332_vm5, %v350_v24, 0.0 }
  0xef   : > { %v511_v17 = vpop.f32.mrb[0].mxu0 }
  0xf0   : > { %v300_v18 = vpop.f32.mrb[1].mxu0  ;;  %v329_v19 = vsel %vm328_vm6, %v511_v17, 0.0 }
  0xf1   : > { %330 = vadd.xlane.f32.xlu0 %v329_v19  ;;  %v325_v20 = vsel %vm324_vm7, %v300_v18, 0.0 }
  0xf2   : > { %326 = vadd.xlane.f32.xlu1 %v325_v20 }
  0xf6   : > { %352 = vadd.xlane.f32.xlu1 %v351_v25 }
 0x17e   : > { %v331_v27 = vpop.xlane.xlu0 %330 }
 0x17f   : > { %v337_v28 = vmul.f32 0.015625, %v331_v27  ;;  %v357_v29 = vsel %vm311_vm2, %v331_v27, %v355_v26  ;;  %v327_v30 = vpop.xlane.xlu1 %326 }
 0x180   : > { %360 = vst.msk [vmem:[%s208_s27 + $0x8] sm:$0xff] %vm358_vm8, %v357_v29  ;;  %v336_v31 = vmul.f32 0.015625, %v327_v30  ;;  %359 = vst.msk [vmem:[%s208_s27] sm:$0xff] %vm358_vm8, %v327_v30 }
 0x181   : > { %v339_v32 = vsub.f32 %v511_v17, %v337_v28 }
 0x182   : > { %v338_v33 = vsub.f32 %v300_v18, %v336_v31 }
 0x183   : > { %v341_v34 = vmul.f32 %v339_v32, %v339_v32  ;;  %v353_v38 = vpop.xlane.xlu1 %352 }
 0x184   : > { %v340_v35 = vmul.f32 %v338_v33, %v338_v33  ;;  %v362_v39 = vrot.slane %v353_v38, 7 }
 0x185   : > { %v345_v36 = vsel %vm328_vm6, %v341_v34, 0.0 }
 0x186   : > { %346 = vadd.xlane.f32.xlu0 %v345_v36  ;;  %v342_v37 = vsel %vm324_vm7, %v340_v35, 0.0 }
 0x187   : > { %343 = vadd.xlane.f32.xlu1 %v342_v37 }
 0x213   : > { %v347_v40 = vpop.xlane.xlu0 %346 }
 0x214   : > { %v364_v41 = vsel %vm311_vm2, %v347_v40, %v362_v39  ;;  %v344_v42 = vpop.xlane.xlu1 %343 }
 0x215   : > { %366 = vst.msk [vmem:[%s215_s30 + $0x8] sm:$0xff] %vm358_vm8, %v364_v41  ;;  %365 = vst.msk [vmem:[%s215_s30] sm:$0xff] %vm358_vm8, %v344_v42 }
 0x216 PF: > { %s14_s14 = sadd.s32 1, %s569_s14   ;;  %s657_s12 = smov %s565_s13 }
 0x217   : > { %p11_p5 = scmp.ge.s32.totalorder %s14_s14, 4   ;;  %s658_s13 = smov %s660_s15 }
 0x219   :  { %13 = sbr.rel (!%p11_p5) target bundleno = 2 (0x2), region = 70 }

</bundles_post_ra>
